<compile_context>
chip_gen: v5e
topology: v5e:2x2
jax: 0.10.0
libtpu: 0.0.40
codegen_flags: <defaults>
</compile_context>

<pallas_src>
import jax
import jax.numpy as jnp
from jax.experimental import pallas as pl
from jax.experimental.pallas import tpu as pltpu

INPUT_SIZE = 32
HIDDEN_SIZE = 64
OUTPUT_SIZE = 1326            # 52 choose 2 two-card combinations
PADDED_OUT = 1408             # 11 * 128 -> lane-dense logits / softmax compute
BATCH = 8


def _mlp_softmax_kernel(x_ref, w12_ref, b12_ref, w3_ref, b3_ref, out_ref):
    """One batch tile: two ReLU-MLP layers (bf16 MXU, f32 accum), projection to
    1408 padded logits, numerically-stable softmax, store of the real 1326."""
    x = x_ref[...]                       # (bm, 32) f32
    w12 = w12_ref[...]                   # (96, 64) bf16  -> w1 | w2
    b12 = b12_ref[...]                   # (2, 64)  f32   -> b1 | b2

    w1 = w12[:INPUT_SIZE, :]
    w2 = w12[INPUT_SIZE:, :]
    b1 = b12[0:1, :]
    b2 = b12[1:2, :]

    # fc1 + ReLU  (bf16 inputs, f32 accumulation)
    h1 = jnp.dot(x.astype(jnp.bfloat16), w1,
                 preferred_element_type=jnp.float32) + b1
    h1 = jnp.maximum(h1, 0.0)

    # fc2 + ReLU
    h2 = jnp.dot(h1.astype(jnp.bfloat16), w2,
                 preferred_element_type=jnp.float32) + b2
    h2 = jnp.maximum(h2, 0.0)

    # fc3 -> padded logits (bm, 1408); padded bias columns are -1e30
    logits = jnp.dot(h2.astype(jnp.bfloat16), w3_ref[...],
                     preferred_element_type=jnp.float32) + b3_ref[...]

    # Stable softmax along the lane-dense padded axis; padded lanes -> exp == 0.
    m = jnp.max(logits, axis=-1, keepdims=True)
    e = jnp.exp(logits - m)
    denom = jnp.sum(e, axis=-1, keepdims=True)
    inv = 1.0 / denom                    # exact per-row reciprocal (bm, 1)
    probs = e * inv                      # (bm, 1408), rows sum to 1 exactly

    # Store only the real 1326 columns (last lane-block is a masked vst).
    out_ref[...] = probs[:, :OUTPUT_SIZE].astype(out_ref.dtype)


def _round_up(n, m):
    return ((n + m - 1) // m) * m


def _choose_bm(batch):
    """Batch-tile rows: fill the MXU M block (<=256) and, once there is enough
    work, split into >=2 tiles so both v7x TensorCores are busy."""
    bm = min(256, _round_up(max(batch, 1), 8))
    if batch >= 64:
        bm = min(bm, _round_up(-(-batch // 2), 8))
    return bm


def opponent_card_predictor_forward(x, params, out_dtype=jnp.float32):
    """x: (batch, INPUT_SIZE) float32 -> (batch, OUTPUT_SIZE) probabilities."""
    w12, b12, w3p, b3p = params
    batch, in_size = x.shape

    bm = _choose_bm(batch)
    padded_batch = _round_up(batch, bm)
    if padded_batch != batch:
        x = jnp.pad(x, ((0, padded_batch - batch), (0, 0)))
    grid = (padded_batch // bm,)

    flops = 2 * padded_batch * (in_size * HIDDEN_SIZE
                                + HIDDEN_SIZE * HIDDEN_SIZE
                                + HIDDEN_SIZE * PADDED_OUT)
    transcendentals = padded_batch * PADDED_OUT
    bytes_accessed = (x.size * 4 + w12.size * 2 + b12.size * 4
                      + w3p.size * 2 + b3p.size * 4
                      + padded_batch * OUTPUT_SIZE * jnp.dtype(out_dtype).itemsize)

    out = pl.pallas_call(
        _mlp_softmax_kernel,
        out_shape=jax.ShapeDtypeStruct((padded_batch, OUTPUT_SIZE), out_dtype),
        grid_spec=pltpu.PrefetchScalarGridSpec(
            num_scalar_prefetch=0,
            grid=grid,
            in_specs=[
                pl.BlockSpec((bm, in_size), lambda i: (i, 0)),              # x tile
                pl.BlockSpec((INPUT_SIZE + HIDDEN_SIZE, HIDDEN_SIZE),
                             lambda i: (0, 0)),                             # w1|w2 (bf16)
                pl.BlockSpec((2, HIDDEN_SIZE), lambda i: (0, 0)),           # b1|b2
                pl.BlockSpec((HIDDEN_SIZE, PADDED_OUT), lambda i: (0, 0)),  # w3 (bf16)
                pl.BlockSpec((1, PADDED_OUT), lambda i: (0, 0)),            # b3 (padded)
            ],
            out_specs=pl.BlockSpec((bm, OUTPUT_SIZE), lambda i: (i, 0)),
        ),
        compiler_params=pltpu.CompilerParams(
            dimension_semantics=("parallel",)),
        cost_estimate=pl.CostEstimate(flops=flops,
                                      transcendentals=transcendentals,
                                      bytes_accessed=bytes_accessed),
    )(x, w12, b12, w3p, b3p)

    if padded_batch != batch:
        out = out[:batch]        # row slice only; no column slice anymore
    return out


def init_params(key, input_size=INPUT_SIZE, hidden_size=HIDDEN_SIZE,
                output_size=OUTPUT_SIZE):
    """PyTorch Linear-style uniform init, packed for the kernel:
       w12: (input+hidden, hidden) bf16;  b12: (2, hidden) f32;
       w3p: (hidden, PADDED_OUT) bf16 (zero-padded); b3p: (1, PADDED_OUT) f32
       with -1e30 in the padded columns."""
    ks = jax.random.split(key, 6)

    def linear(kw, kb, fan_in, fan_out):
        bound = 1.0 / jnp.sqrt(fan_in)
        w = jax.random.uniform(kw, (fan_in, fan_out), jnp.float32, -bound, bound)
        b = jax.random.uniform(kb, (1, fan_out), jnp.float32, -bound, bound)
        return w, b

    w1, b1 = linear(ks[0], ks[1], input_size, hidden_size)
    w2, b2 = linear(ks[2], ks[3], hidden_size, hidden_size)
    w3, b3 = linear(ks[4], ks[5], hidden_size, output_size)

    w12 = jnp.concatenate([w1, w2], axis=0).astype(jnp.bfloat16)
    b12 = jnp.concatenate([b1, b2], axis=0)                      # f32
    w3p = jnp.zeros((hidden_size, PADDED_OUT), jnp.float32)
    w3p = w3p.at[:, :output_size].set(w3).astype(jnp.bfloat16)
    b3p = jnp.full((1, PADDED_OUT), -1e30, jnp.float32)
    b3p = b3p.at[:, :output_size].set(b3)
    return (w12, b12, w3p, b3p)


def _reference_forward(x, params):
    """Pure-JAX reference using the same packed/quantized params as the kernel."""
    w12, b12, w3p, b3p = params
    w1 = w12[:INPUT_SIZE, :]
    w2 = w12[INPUT_SIZE:, :]
    b1 = b12[0:1, :]
    b2 = b12[1:2, :]
    h1 = jnp.maximum(jnp.dot(x.astype(jnp.bfloat16), w1,
                             preferred_element_type=jnp.float32) + b1, 0.0)
    h2 = jnp.maximum(jnp.dot(h1.astype(jnp.bfloat16), w2,
                             preferred_element_type=jnp.float32) + b2, 0.0)
    logits = jnp.dot(h2.astype(jnp.bfloat16), w3p,
                     preferred_element_type=jnp.float32) + b3p
    probs = jax.nn.softmax(logits, axis=-1)
    return probs[:, :OUTPUT_SIZE]


# TODO(synk): predict_cards (argmax + card-string lookup) is host-side
# post-processing of the probabilities and is intentionally not a kernel.

if __name__ == "__main__":
    key = jax.random.PRNGKey(0)
    k_x, k_p = jax.random.split(key)

    params = init_params(k_p)

    # Small-batch path (single tile).
    x = jax.random.normal(k_x, (BATCH, INPUT_SIZE), jnp.float32)
    probs = opponent_card_predictor_forward(x, params)
    probs = jax.block_until_ready(probs)

    ref = _reference_forward(x, params)
    assert probs.shape == (BATCH, OUTPUT_SIZE)
    assert bool(jnp.allclose(jnp.sum(probs, axis=-1), 1.0, atol=1e-3))
    assert bool(jnp.allclose(probs, ref, atol=2e-3, rtol=2e-2))

    # Multi-tile path (grid=(2,), batch padding, >=2 tiles for megacore).
    x2 = jax.random.normal(k_x, (100, INPUT_SIZE), jnp.float32)
    probs2 = jax.block_until_ready(opponent_card_predictor_forward(x2, params))
    assert probs2.shape == (100, OUTPUT_SIZE)
    assert bool(jnp.allclose(jnp.sum(probs2, axis=-1), 1.0, atol=1e-3))
    assert bool(jnp.allclose(probs2, _reference_forward(x2, params),
                             atol=2e-3, rtol=2e-2))

    print("KERNEL_OK")
</pallas_src>

<mosaic_0001>
module attributes {stable_mosaic.version = 11 : i64} {
  func.func @_mlp_softmax_kernel(%arg0: i32, %arg1: memref<8x32xf32, #tpu.memory_space<vmem>>, %arg2: memref<96x64xbf16, #tpu.memory_space<vmem>>, %arg3: memref<2x64xf32, #tpu.memory_space<vmem>>, %arg4: memref<64x1408xbf16, #tpu.memory_space<vmem>>, %arg5: memref<1x1408xf32, #tpu.memory_space<vmem>>, %arg6: memref<8x1326xf32, #tpu.memory_space<vmem>>) attributes {dimension_semantics = [#tpu.dimension_semantics<parallel>], iteration_bounds = array<i64: 1>, scalar_prefetch = 0 : i64, scratch_operands = 0 : i64, tpu.core_type = #tpu.core_type<tc>, window_params = [{transform_indices = @transform_0, window_bounds = array<i64: 8, 32>}, {pipeline_mode = #tpu.pipeline_mode<synchronous>, transform_indices = @transform_1, window_bounds = array<i64: 96, 64>}, {pipeline_mode = #tpu.pipeline_mode<synchronous>, transform_indices = @transform_2, window_bounds = array<i64: 2, 64>}, {pipeline_mode = #tpu.pipeline_mode<synchronous>, transform_indices = @transform_3, window_bounds = array<i64: 64, 1408>}, {pipeline_mode = #tpu.pipeline_mode<synchronous>, transform_indices = @transform_4, window_bounds = array<i64: 1, 1408>}, {transform_indices = @transform_5, window_bounds = array<i64: 8, 1326>}]} {
    %c0 = arith.constant 0 : index
    %c0_0 = arith.constant 0 : index
    %0 = vector.load %arg1[%c0, %c0_0] : memref<8x32xf32, #tpu.memory_space<vmem>>, vector<8x32xf32>
    %c0_1 = arith.constant 0 : index
    %c0_2 = arith.constant 0 : index
    %1 = vector.load %arg2[%c0_1, %c0_2] : memref<96x64xbf16, #tpu.memory_space<vmem>>, vector<96x64xbf16>
    %c0_3 = arith.constant 0 : index
    %c0_4 = arith.constant 0 : index
    %2 = vector.load %arg3[%c0_3, %c0_4] : memref<2x64xf32, #tpu.memory_space<vmem>>, vector<2x64xf32>
    %3 = vector.extract_strided_slice %1 {offsets = [0, 0], sizes = [32, 64], strides = [1, 1]} : vector<96x64xbf16> to vector<32x64xbf16>
    %4 = vector.extract_strided_slice %1 {offsets = [32, 0], sizes = [64, 64], strides = [1, 1]} : vector<96x64xbf16> to vector<64x64xbf16>
    %5 = vector.extract_strided_slice %2 {offsets = [0, 0], sizes = [1, 64], strides = [1, 1]} : vector<2x64xf32> to vector<1x64xf32>
    %6 = vector.extract_strided_slice %2 {offsets = [1, 0], sizes = [1, 64], strides = [1, 1]} : vector<2x64xf32> to vector<1x64xf32>
    %7 = arith.truncf %0 : vector<8x32xf32> to vector<8x32xbf16>
    %cst = arith.constant dense<0.000000e+00> : vector<8x64xf32>
    %8 = tpu.matmul %7, %3, %cst {dimension_numbers = #tpu.dot_dimension_numbers<[1], [0], [0], [1], [0, 0, 1, 1], [], []>} : vector<8x32xbf16>, vector<32x64xbf16>, vector<8x64xf32> -> vector<8x64xf32>
    %9 = vector.broadcast %5 : vector<1x64xf32> to vector<8x64xf32>
    %10 = arith.addf %8, %9 : vector<8x64xf32>
    %cst_5 = arith.constant 0.000000e+00 : f32
    %11 = vector.broadcast %cst_5 : f32 to vector<8x64xf32>
    %12 = arith.maximumf %10, %11 : vector<8x64xf32>
    %13 = arith.truncf %12 : vector<8x64xf32> to vector<8x64xbf16>
    %cst_6 = arith.constant dense<0.000000e+00> : vector<8x64xf32>
    %14 = tpu.matmul %13, %4, %cst_6 {dimension_numbers = #tpu.dot_dimension_numbers<[1], [0], [0], [1], [0, 0, 1, 1], [], []>} : vector<8x64xbf16>, vector<64x64xbf16>, vector<8x64xf32> -> vector<8x64xf32>
    %15 = vector.broadcast %6 : vector<1x64xf32> to vector<8x64xf32>
    %16 = arith.addf %14, %15 : vector<8x64xf32>
    %cst_7 = arith.constant 0.000000e+00 : f32
    %17 = vector.broadcast %cst_7 : f32 to vector<8x64xf32>
    %18 = arith.maximumf %16, %17 : vector<8x64xf32>
    %19 = arith.truncf %18 : vector<8x64xf32> to vector<8x64xbf16>
    %c0_8 = arith.constant 0 : index
    %c0_9 = arith.constant 0 : index
    %20 = vector.load %arg4[%c0_8, %c0_9] : memref<64x1408xbf16, #tpu.memory_space<vmem>>, vector<64x1408xbf16>
    %cst_10 = arith.constant dense<0.000000e+00> : vector<8x1408xf32>
    %21 = tpu.matmul %19, %20, %cst_10 {dimension_numbers = #tpu.dot_dimension_numbers<[1], [0], [0], [1], [0, 0, 1, 1], [], []>} : vector<8x64xbf16>, vector<64x1408xbf16>, vector<8x1408xf32> -> vector<8x1408xf32>
    %c0_11 = arith.constant 0 : index
    %c0_12 = arith.constant 0 : index
    %22 = vector.load %arg5[%c0_11, %c0_12] : memref<1x1408xf32, #tpu.memory_space<vmem>>, vector<1x1408xf32>
    %23 = vector.broadcast %22 : vector<1x1408xf32> to vector<8x1408xf32>
    %24 = arith.addf %21, %23 : vector<8x1408xf32>
    %cst_13 = arith.constant dense<0xFF800000> : vector<8xf32>
    %25 = vector.multi_reduction <maximumf>, %24, %cst_13 [1] : vector<8x1408xf32> to vector<8xf32>
    %26 = vector.shape_cast %25 : vector<8xf32> to vector<8x1xf32>
    %27 = vector.broadcast %26 : vector<8x1xf32> to vector<8x1408xf32>
    %28 = arith.subf %24, %27 : vector<8x1408xf32>
    %29 = math.exp %28 : vector<8x1408xf32>
    %cst_14 = arith.constant dense<0.000000e+00> : vector<8xf32>
    %30 = vector.multi_reduction <add>, %29, %cst_14 [1] : vector<8x1408xf32> to vector<8xf32>
    %31 = vector.shape_cast %30 : vector<8xf32> to vector<8x1xf32>
    %cst_15 = arith.constant 1.000000e+00 : f32
    %32 = vector.broadcast %cst_15 : f32 to vector<8x1xf32>
    %33 = arith.divf %32, %31 : vector<8x1xf32>
    %34 = vector.broadcast %33 : vector<8x1xf32> to vector<8x1408xf32>
    %35 = arith.mulf %29, %34 : vector<8x1408xf32>
    %36 = vector.extract_strided_slice %35 {offsets = [0, 0], sizes = [8, 1326], strides = [1, 1]} : vector<8x1408xf32> to vector<8x1326xf32>
    %c0_16 = arith.constant 0 : index
    %c0_17 = arith.constant 0 : index
    %37 = vector.load %arg6[%c0_16, %c0_17] : memref<8x1326xf32, #tpu.memory_space<vmem>>, vector<8x1326xf32>
    tpu.vector_store %arg6[%c0_16, %c0_17], %36 {strides = array<i32>} : memref<8x1326xf32, #tpu.memory_space<vmem>>, vector<8x1326xf32>,
    return
  }
  func.func @transform_0(%arg0: i32) -> (i32, i32) {
    %c0_i32 = arith.constant 0 : i32
    %c0_i32_0 = arith.constant 0 : i32
    return %arg0, %c0_i32 : i32, i32
  }
  func.func @transform_1(%arg0: i32) -> (i32, i32) {
    %c0_i32 = arith.constant 0 : i32
    %c0_i32_0 = arith.constant 0 : i32
    %c0_i32_1 = arith.constant 0 : i32
    return %c0_i32, %c0_i32_0 : i32, i32
  }
  func.func @transform_2(%arg0: i32) -> (i32, i32) {
    %c0_i32 = arith.constant 0 : i32
    %c0_i32_0 = arith.constant 0 : i32
    %c0_i32_1 = arith.constant 0 : i32
    return %c0_i32, %c0_i32_0 : i32, i32
  }
  func.func @transform_3(%arg0: i32) -> (i32, i32) {
    %c0_i32 = arith.constant 0 : i32
    %c0_i32_0 = arith.constant 0 : i32
    %c0_i32_1 = arith.constant 0 : i32
    return %c0_i32, %c0_i32_0 : i32, i32
  }
  func.func @transform_4(%arg0: i32) -> (i32, i32) {
    %c0_i32 = arith.constant 0 : i32
    %c0_i32_0 = arith.constant 0 : i32
    %c0_i32_1 = arith.constant 0 : i32
    return %c0_i32, %c0_i32_0 : i32, i32
  }
  func.func @transform_5(%arg0: i32) -> (i32, i32) {
    %c0_i32 = arith.constant 0 : i32
    %c0_i32_0 = arith.constant 0 : i32
    return %arg0, %c0_i32 : i32, i32
  }
}

</mosaic_0001>

<bundles_post_ra>
// kernel: tpu_custom_call.1
= control target key start
LH: loop header
LB: loop body
LE: loop exit
PB: predicated region body
PF: predicated region fallthrough
CT: control target
= control target key end

     0   :  { %10 = vsyncpa [#allocation3], 0  ;;  %s1118_s0 = inlined_call_operand.vmem [shape: f32[8,32], index: 0, kind: input, shape index: {}]   ;;  %s1119_s1 = inlined_call_operand.vmem [shape: bf16[96,64], index: 1, kind: input, shape index: {}]   ;;  %s1120_s2 = inlined_call_operand.vmem [shape: f32[2,64], index: 2, kind: input, shape index: {}]   ;;  %s1121_s3 = inlined_call_operand.hbm [shape: bf16[64,1408], index: 3, kind: input, shape index: {}]   ;;  %s1122_s4 = inlined_call_operand.vmem [shape: f32[1,1408], index: 4, kind: input, shape index: {}]   ;;  %s1123_s5 = inlined_call_operand.hbm [shape: f32[8,1326], index: 5, kind: output, shape index: {}]  }
   0x1   :  { %11 = vsyncpa [#allocation4], 0  ;;  %s22_s20 = sshll.u32 %s1121_s3, 4  ;;  %s1028_s21 = smov [#allocation2]   ;;  %s23_s20 = int_to_ptr.hbm [resolvable:$true] %s22_s20 }
   0x2   :  { %s24_s22 = sshll.u32 %s1028_s21, 4  ;;  %s1029_s23 = smov 704   ;;  %s25_s22 = int_to_ptr.vmem [resolvable:$true] %s24_s22 }
   0x3   :  { %s1030_s24 = smov 44  }
   0x4   :  { %30 = dma.hbm_to_vmem [thread:$0]  %s23_s20, 5632, %s25_s22, [#allocation3], %s1029_s23, %s1029_s23, %s1030_s24  }
   0x5   :  { %1024 = dma.done.wait [#allocation3], 5632  }
   0x6   :  { %1025 = vsyncadd [#allocation3], 4294961664  ;;  %v899_v0 = vld [vmem:[%s1119_s1 + $0x8] sm:$0xff]  ;;  %v898_v2 = vld [vmem:[%s1119_s1] sm:$0xff]  ;;  %vm66_vm0 = vcmask 261120   ;;  %vm110_vm1 = vcmask 523264  }
   0x7   :  { %v903_v1 = vld [vmem:[%s1119_s1 + $0x28] sm:$0xff]  ;;  %76 = vmatpush.bf16.msra.mxu0 %v899_v0  ;;  %v38_v3 = vld [vmem:[%s1118_s0] sm:$0xff]  ;;  %v901_v6 = vld [vmem:[%s1119_s1 + $0x18] sm:$0xff]  ;;  %s675_s19 = sshll.u32 %s1123_s5, 4  ;;  %vm666_vm6 = vcmask 375808   ;;  %s676_s19 = int_to_ptr.hbm [resolvable:$true] %s675_s19 }
   0x8   :  { %118 = vmatpush.bf16.msra.mxu1 %v903_v1  ;;  %v902_v4 = vld [vmem:[%s1119_s1 + $0x20] sm:$0xff]  ;;  %v52_v5 = vpack.c.bf16 %v38_v3, %v38_v3  ;;  %v900_v7 = vld [vmem:[%s1119_s1 + $0x10] sm:$0xff]  ;;  %v845_v8 = vld [vmem:[#allocation2 + $0x108] sm:$0xf] }
   0x9   :  { %v942_v9 = vld [vmem:[#allocation2 + $0x130] sm:$0xf0]  ;;  %v937_v10 = vld [vmem:[#allocation2 + $0x10c] sm:$0xf]  ;;  %v847_v12 = vld [vmem:[#allocation2 + $0x134] sm:$0xf0] }
   0xa   :  { %v846_v11 = vor.u32 %v942_v9, %v845_v8  ;;  %v853_v13 = vld [vmem:[#allocation2 + $0x110] sm:$0xf]  ;;  %v943_v14 = vld [vmem:[#allocation2 + $0x138] sm:$0xf0]  ;;  %v850_v15 = vor.u32 %v937_v10, %v847_v12  ;;  %v938_v17 = vld [vmem:[#allocation2 + $0x114] sm:$0xf] }
   0xb   :  { %77 = vmatpush.bf16.msra.mxu0 %v898_v2  ;;  %v854_v16 = vor.u32 %v943_v14, %v853_v13  ;;  %v855_v18 = vld [vmem:[#allocation2 + $0x13c] sm:$0xf0]  ;;  %v801_v19 = vld [vmem:[#allocation2 + $0xb0] sm:$0xf]  ;;  %v931_v21 = vld [vmem:[#allocation2 + $0xd8] sm:$0xf0] }
   0xc   :  { %119 = vmatpush.bf16.msra.mxu1 %v902_v4  ;;  %434 = vmatpush.bf16.msra.mxu2 %v846_v11  ;;  %v858_v20 = vor.u32 %v938_v17, %v855_v18  ;;  %v926_v22 = vld [vmem:[#allocation2 + $0xb4] sm:$0xf]  ;;  %v803_v23 = vld [vmem:[#allocation2 + $0xdc] sm:$0xf0]  ;;  %v802_v24 = vor.u32 %v931_v21, %v801_v19  ;;  %v809_v26 = vld [vmem:[#allocation2 + $0xb8] sm:$0xf] }
   0xd   :  { %447 = vmatpush.bf16.msra.mxu3 %v850_v15  ;;  %v806_v25 = vor.u32 %v926_v22, %v803_v23  ;;  %v932_v27 = vld [vmem:[#allocation2 + $0xe0] sm:$0xf0]  ;;  %v927_v28 = vld [vmem:[#allocation2 + $0xbc] sm:$0xf]  ;;  %v811_v30 = vld [vmem:[#allocation2 + $0xe4] sm:$0xf0] }
   0xe   :  { %693 = vmatmul.msk.bf16.vlgmr.msra.gmra.mxu0 %vm66_vm0, %v52_v5  ;;  %v810_v29 = vor.u32 %v932_v27, %v809_v26  ;;  %v814_v31 = vor.u32 %v927_v28, %v811_v30  ;;  %v1089_v32 = vld [vmem:[%s1120_s2] sm:$0x3]  ;;  %v757_v39 = vld [vmem:[#allocation2 + $0x58] sm:$0xf]  ;;  %v920_v40 = vld [vmem:[#allocation2 + $0x80] sm:$0xf0] }
   0xf   :  { %460 = vmatpush.bf16.msrb.mxu0 %v854_v16  ;;  %v53_v33 = vperm.slane %v1089_v32, 0  ;;  %v915_v41 = vld [vmem:[#allocation2 + $0x5c] sm:$0xf]  ;;  %v758_v42 = vor.u32 %v920_v40, %v757_v39  ;;  %v759_v43 = vld [vmem:[#allocation2 + $0x84] sm:$0xf0] }
  0x10   :  { %120 = vmatpush.bf16.msra.mxu1 %v901_v6  ;;  %435 = vmatpush.bf16.msra.mxu2 %v802_v24  ;;  %v765_v44 = vld [vmem:[#allocation2 + $0x60] sm:$0xf]  ;;  %v921_v45 = vld [vmem:[#allocation2 + $0x88] sm:$0xf0]  ;;  %v762_v46 = vor.u32 %v915_v41, %v759_v43  ;;  %v916_v48 = vld [vmem:[#allocation2 + $0x64] sm:$0xf] }
  0x11   :  { %448 = vmatpush.bf16.msra.mxu3 %v806_v25  ;;  %v766_v47 = vor.u32 %v921_v45, %v765_v44  ;;  %v767_v49 = vld [vmem:[#allocation2 + $0x8c] sm:$0xf0]  ;;  %v713_v51 = vld [vmem:[#allocation2] sm:$0xf]  ;;  %v909_v52 = vld [vmem:[#allocation2 + $0x28] sm:$0xf0] }
  0x12   :  { %v770_v50 = vor.u32 %v916_v48, %v767_v49  ;;  %v904_v53 = vld [vmem:[#allocation2 + $0x4] sm:$0xf]  ;;  %v714_v54 = vor.u32 %v909_v52, %v713_v51  ;;  %v715_v55 = vld [vmem:[#allocation2 + $0x2c] sm:$0xf0]  ;;  %v721_v56 = vld [vmem:[#allocation2 + $0x8] sm:$0xf] }
  0x13   :  { %461 = vmatpush.bf16.msrb.mxu0 %v810_v29  ;;  %v910_v57 = vld [vmem:[#allocation2 + $0x30] sm:$0xf0]  ;;  %v718_v58 = vor.u32 %v904_v53, %v715_v55  ;;  %v905_v60 = vld [vmem:[#allocation2 + $0xc] sm:$0xf]  ;;  %v723_v61 = vld [vmem:[#allocation2 + $0x34] sm:$0xf0] }
  0x14   :  { %121 = vmatpush.bf16.msra.mxu1 %v900_v7  ;;  %436 = vmatpush.bf16.msra.mxu2 %v758_v42  ;;  %v722_v59 = vor.u32 %v910_v57, %v721_v56  ;;  %v726_v62 = vor.u32 %v905_v60, %v723_v61  ;;  %v861_v63 = vld [vmem:[#allocation2 + $0x118] sm:$0xf]  ;;  %v944_v0 = vld [vmem:[#allocation2 + $0x140] sm:$0xf0]  ;;  %v939_v1 = vld [vmem:[#allocation2 + $0x11c] sm:$0xf] }
  0x15   :  { %449 = vmatpush.bf16.msra.mxu3 %v762_v46  ;;  %v862_v2 = vor.u32 %v944_v0, %v861_v63  ;;  %v863_v3 = vld [vmem:[#allocation2 + $0x144] sm:$0xf0]  ;;  %v869_v4 = vld [vmem:[#allocation2 + $0x120] sm:$0xf]  ;;  %v945_v5 = vld [vmem:[#allocation2 + $0x148] sm:$0xf0] }
  0x16   :  { %v866_v6 = vor.u32 %v939_v1, %v863_v3  ;;  %v870_v7 = vor.u32 %v945_v5, %v869_v4  ;;  %v940_v8 = vld [vmem:[#allocation2 + $0x124] sm:$0xf]  ;;  %v871_v9 = vld [vmem:[#allocation2 + $0x14c] sm:$0xf0]  ;;  %v817_v10 = vld [vmem:[#allocation2 + $0xc0] sm:$0xf] }
  0x17   :  { %462 = vmatpush.bf16.msrb.mxu0 %v766_v47  ;;  %v874_v11 = vor.u32 %v940_v8, %v871_v9  ;;  %v933_v12 = vld [vmem:[#allocation2 + $0xe8] sm:$0xf0]  ;;  %v928_v13 = vld [vmem:[#allocation2 + $0xc4] sm:$0xf]  ;;  %v819_v14 = vld [vmem:[#allocation2 + $0xec] sm:$0xf0] }
  0x18   :  { %473 = vmatpush.bf16.msrb.mxu1 %v858_v20  ;;  %437 = vmatpush.bf16.msra.mxu2 %v714_v54  ;;  %v818_v15 = vor.u32 %v933_v12, %v817_v10  ;;  %v822_v16 = vor.u32 %v928_v13, %v819_v14  ;;  %v825_v17 = vld [vmem:[#allocation2 + $0xc8] sm:$0xf]  ;;  %v934_v18 = vld [vmem:[#allocation2 + $0xf0] sm:$0xf0]  ;;  %v929_v19 = vld [vmem:[#allocation2 + $0xcc] sm:$0xf] }
  0x19   :  { %450 = vmatpush.bf16.msra.mxu3 %v718_v58  ;;  %v826_v20 = vor.u32 %v934_v18, %v825_v17  ;;  %v827_v21 = vld [vmem:[#allocation2 + $0xf4] sm:$0xf0]  ;;  %v773_v22 = vld [vmem:[#allocation2 + $0x68] sm:$0xf]  ;;  %v922_v23 = vld [vmem:[#allocation2 + $0x90] sm:$0xf0] }
  0x1a   :  { %v830_v24 = vor.u32 %v929_v19, %v827_v21  ;;  %v917_v25 = vld [vmem:[#allocation2 + $0x6c] sm:$0xf]  ;;  %v775_v26 = vld [vmem:[#allocation2 + $0x94] sm:$0xf0]  ;;  %v781_v27 = vld [vmem:[#allocation2 + $0x70] sm:$0xf]  ;;  %v774_v28 = vor.u32 %v922_v23, %v773_v22 }
  0x1b   :  { %463 = vmatpush.bf16.msrb.mxu0 %v722_v59  ;;  %v923_v29 = vld [vmem:[#allocation2 + $0x98] sm:$0xf0]  ;;  %v918_v30 = vld [vmem:[#allocation2 + $0x74] sm:$0xf]  ;;  %v731_v39 = vld [vmem:[#allocation2 + $0x3c] sm:$0xf0] }
  0x1c   :  { %474 = vmatpush.bf16.msrb.mxu1 %v814_v31  ;;  %486 = vmatpush.bf16.msrb.mxu2 %v862_v2  ;;  %v783_v31 = vld [vmem:[#allocation2 + $0x9c] sm:$0xf0]  ;;  %v737_v40 = vld [vmem:[#allocation2 + $0x18] sm:$0xf]  ;;  %v912_v41 = vld [vmem:[#allocation2 + $0x40] sm:$0xf0] }
  0x1d   :  { %499 = vmatpush.bf16.msrb.mxu3 %v866_v6  ;;  %v907_v42 = vld [vmem:[#allocation2 + $0x1c] sm:$0xf]  ;;  %v739_v43 = vld [vmem:[#allocation2 + $0x44] sm:$0xf0]  ;;  %v738_v46 = vor.u32 %v912_v41, %v737_v40  ;;  %v85_v48 = vperm.slane %v1089_v32, 1  ;;  %v177_v40 = vld [vmem:[%s1122_s4] sm:$0xff] }
  0x1e   :  { %v742_v47 = vor.u32 %v907_v42, %v739_v43  ;;  %v877_v51 = vld [vmem:[#allocation2 + $0x128] sm:$0xf]  ;;  %v946_v52 = vld [vmem:[#allocation2 + $0x150] sm:$0xf0]  ;;  %v941_v53 = vld [vmem:[#allocation2 + $0x12c] sm:$0xf] }
  0x1f   :  { %512 = vmatpush.bf16.msra.mxu0 %v870_v7  ;;  %v879_v54 = vld [vmem:[#allocation2 + $0x154] sm:$0xf0]  ;;  %v885_v56 = vld [vmem:[#allocation2 + $0x130] sm:$0xf]  ;;  %v947_v57 = vld [vmem:[#allocation2 + $0x158] sm:$0xf0]  ;;  %v878_v59 = vor.u32 %v946_v52, %v877_v51 }
  0x20   :  { %475 = vmatpush.bf16.msrb.mxu1 %v770_v50  ;;  %487 = vmatpush.bf16.msrb.mxu2 %v818_v15  ;;  %v882_v60 = vor.u32 %v941_v53, %v879_v54  ;;  %v833_v61 = vld [vmem:[#allocation2 + $0xd0] sm:$0xf]  ;;  %v935_v63 = vld [vmem:[#allocation2 + $0xf8] sm:$0xf0]  ;;  %v930_v0 = vld [vmem:[#allocation2 + $0xd4] sm:$0xf] }
  0x21   :  { %500 = vmatpush.bf16.msrb.mxu3 %v822_v16  ;;  %v835_v1 = vld [vmem:[#allocation2 + $0xfc] sm:$0xf0]  ;;  %v841_v32 = vld [vmem:[#allocation2 + $0xd8] sm:$0xf]  ;;  %v936_v2 = vld [vmem:[#allocation2 + $0x100] sm:$0xf0]  ;;  %v834_v4 = vor.u32 %v935_v63, %v833_v61 }
  0x22   :  { %v838_v5 = vor.u32 %v930_v0, %v835_v1  ;;  %v789_v6 = vld [vmem:[#allocation2 + $0x78] sm:$0xf]  ;;  %v842_v7 = vor.u32 %v936_v2, %v841_v32  ;;  %v924_v8 = vld [vmem:[#allocation2 + $0xa0] sm:$0xf0]  ;;  %v919_v9 = vld [vmem:[#allocation2 + $0x7c] sm:$0xf] }
  0x23   :  { %513 = vmatpush.bf16.msra.mxu0 %v826_v20  ;;  %v791_v10 = vld [vmem:[#allocation2 + $0xa4] sm:$0xf0]  ;;  %v925_v12 = vld [vmem:[#allocation2 + $0xa8] sm:$0xf0]  ;;  %v790_v13 = vor.u32 %v924_v8, %v789_v6  ;;  %v745_v15 = vld [vmem:[#allocation2 + $0x20] sm:$0xf] }
  0x24   :  { %476 = vmatpush.bf16.msrb.mxu1 %v726_v62  ;;  %488 = vmatpush.bf16.msrb.mxu2 %v774_v28  ;;  %v886_v62 = vor.u32 %v947_v57, %v885_v56  ;;  %v794_v14 = vor.u32 %v919_v9, %v791_v10  ;;  %v913_v17 = vld [vmem:[#allocation2 + $0x48] sm:$0xf0]  ;;  %v908_v18 = vld [vmem:[#allocation2 + $0x24] sm:$0xf]  ;;  %v747_v19 = vld [vmem:[#allocation2 + $0x4c] sm:$0xf0] }
  0x25   :  { %v753_v20 = vld [vmem:[#allocation2 + $0x28] sm:$0xf]  ;;  %v914_v21 = vld [vmem:[#allocation2 + $0x50] sm:$0xf0]  ;;  %v746_v22 = vor.u32 %v913_v17, %v745_v15  ;;  %v750_v23 = vor.u32 %v908_v18, %v747_v19  ;;  %v187_v42 = vperm.slane %v177_v40, 6  ;;  %v183_v43 = vperm.slane %v177_v40, 2 }
  0x26   :  { %v178_v41 = vld [vmem:[%s1122_s4 + $0x8] sm:$0x7]  ;;  %v188_v52 = vperm.slane %v177_v40, 7  ;;  %s1031_s4 = smov [#allocation5]  }
  0x27   :  { %s673_s16 = sshll.u32 %s1031_s4, 4  ;;  %s674_s16 = int_to_ptr.vmem [resolvable:$true] %s673_s16 }
  0x8b   :  { %v79_v34 = vpop.f32.mrf.mxu0 }
  0x8c   :  { %v80_v35 = vadd.f32 %v79_v34, %v53_v33  ;;  %v778_v33 = vor.u32 %v917_v25, %v775_v26  ;;  %v782_v34 = vor.u32 %v923_v29, %v781_v27 }
  0x8e   :  { %v83_v36 = vmax.f32 %v80_v35, 0.0  ;;  %v729_v35 = vld [vmem:[#allocation2 + $0x10] sm:$0xf]  ;;  %501 = vmatpush.bf16.msrb.mxu3 %v778_v33  ;;  %514 = vmatpush.bf16.msra.mxu0 %v782_v34 }
  0x90   :  { %v84_v37 = vpack.c.bf16 %v83_v36, %v83_v36  ;;  %v911_v36 = vld [vmem:[#allocation2 + $0x38] sm:$0xf0] }
  0x91   :  { %v730_v44 = vor.u32 %v911_v36, %v729_v35 }
  0x92   :  { %710 = vmatmul.msk.bf16.vlgmr.msra.gmra.mxu1 %vm110_vm1, %v84_v37  ;;  %v906_v37 = vld [vmem:[#allocation2 + $0x14] sm:$0xf]  ;;  %515 = vmatpush.bf16.msra.mxu0 %v738_v46 }
  0x93   :  { %v81_v38 = vpop.f32.mrf.mxu0  ;;  %525 = vmatpush.bf16.msra.mxu1 %v874_v11  ;;  %v734_v45 = vor.u32 %v906_v37, %v731_v39  ;;  %489 = vmatpush.bf16.msrb.mxu2 %v730_v44  ;;  %v797_v11 = vld [vmem:[#allocation2 + $0x80] sm:$0xf]  ;;  %v185_v44 = vperm.slane %v177_v40, 4 }
  0x94   :  { %v786_v38 = vor.u32 %v918_v30, %v783_v31  ;;  %v798_v16 = vor.u32 %v925_v12, %v797_v11 }
  0x95   :  { %502 = vmatpush.bf16.msrb.mxu3 %v734_v45 }
  0x97   :  { %526 = vmatpush.bf16.msra.mxu1 %v830_v24  ;;  %v754_v24 = vor.u32 %v914_v21, %v753_v20 }
  0x9b   :  { %527 = vmatpush.bf16.msra.mxu1 %v786_v38 }
  0x9f   :  { %528 = vmatpush.bf16.msra.mxu1 %v742_v47  ;;  %v186_v47 = vperm.slane %v177_v40, 5 }
 0x10f   :  { %v123_v49 = vpop.f32.mrf.mxu1 }
 0x110   :  { %v124_v50 = vadd.f32 %v123_v49, %v85_v48  ;;  %v191_v48 = vperm.slane %v178_v41, 2  ;;  %v181_v49 = vperm.slane %v177_v40, 0 }
 0x112   :  { %v127_v55 = vmax.f32 %v124_v50, 0.0  ;;  %v182_v50 = vperm.slane %v177_v40, 1 }
 0x114   :  { %v128_v58 = vpack.c.bf16 %v127_v55, %v127_v55  ;;  %v184_v55 = vperm.slane %v177_v40, 3 }
 0x116   :  { %887 = vmatmul.msk.bf16.vlgmr.msra.gmra.mxu2 %vm110_vm1, %v128_v58  ;;  %888 = vmatmul.msk.bf16.vlgmr.msra.gmra.mxu3 %vm110_vm1, %v128_v58 }
 0x117   :  { %889 = vmatmul.msk.bf16.vlgmr.msrb.gmra.mxu0 %vm110_vm1, %v128_v58  ;;  %890 = vmatmul.msk.bf16.vlgmr.msrb.gmra.mxu1 %vm110_vm1, %v128_v58  ;;  %v125_v3 = vpop.f32.mrf.mxu1 }
 0x118   :  { %538 = vmatpush.bf16.msra.mxu2 %v878_v59  ;;  %551 = vmatpush.bf16.msra.mxu3 %v882_v60  ;;  %v189_v59 = vperm.slane %v178_v41, 0  ;;  %v190_v60 = vperm.slane %v178_v41, 1 }
 0x119   :  { %564 = vmatpush.bf16.msrb.mxu0 %v886_v62 }
 0x11c   :  { %539 = vmatpush.bf16.msra.mxu2 %v834_v4  ;;  %552 = vmatpush.bf16.msra.mxu3 %v838_v5 }
 0x11d   :  { %565 = vmatpush.bf16.msrb.mxu0 %v842_v7 }
 0x120   :  { %540 = vmatpush.bf16.msra.mxu2 %v790_v13  ;;  %553 = vmatpush.bf16.msra.mxu3 %v794_v14 }
 0x121   :  { %566 = vmatpush.bf16.msrb.mxu0 %v798_v16 }
 0x124   :  { %541 = vmatpush.bf16.msra.mxu2 %v746_v22  ;;  %554 = vmatpush.bf16.msra.mxu3 %v750_v23 }
 0x125   :  { %567 = vmatpush.bf16.msrb.mxu0 %v754_v24 }
 0x126   :  { %891 = vmatmul.msk.bf16.vlgmr.msrb.gmra.mxu2 %vm110_vm1, %v128_v58  ;;  %892 = vmatmul.msk.bf16.vlgmr.msrb.gmra.mxu3 %vm110_vm1, %v128_v58 }
 0x127   :  { %893 = vmatmul.msk.bf16.vlgmr.msra.gmra.mxu0 %vm110_vm1, %v128_v58  ;;  %894 = vmatmul.msk.bf16.vlgmr.msra.gmra.mxu1 %vm110_vm1, %v128_v58 }
 0x136   :  { %895 = vmatmul.msk.bf16.vlgmr.msra.gmra.mxu2 %vm110_vm1, %v128_v58  ;;  %896 = vmatmul.msk.bf16.vlgmr.msra.gmra.mxu3 %vm110_vm1, %v128_v58 }
 0x137   :  { %897 = vmatmul.msk.bf16.vlgmr.msrb.gmra.mxu0 %vm110_vm1, %v128_v58 }
 0x194   :  { %v465_v25 = vpop.f32.mrf.mxu0  ;;  %v478_v26 = vpop.f32.mrf.mxu1 }
 0x195   :  { %v466_v54 = vadd.f32 %v465_v25, %v183_v43  ;;  %v479_v1 = vadd.f32 %v478_v26, %v184_v55 }
 0x199   :  { %v439_v27 = vpop.f32.mrf.mxu2  ;;  %v452_v28 = vpop.f32.mrf.mxu3 }
 0x19a   :  { %v440_v61 = vadd.f32 %v439_v27, %v181_v49  ;;  %v453_v62 = vadd.f32 %v452_v28, %v182_v50 }
 0x19c   :  { %v467_v29 = vpop.f32.mrf.mxu0  ;;  %v480_v30 = vpop.f32.mrf.mxu1 }
 0x1a1   :  { %v441_v31 = vpop.f32.mrf.mxu2  ;;  %v454_v33 = vpop.f32.mrf.mxu3 }
 0x1a4   :  { %v517_v34 = vpop.f32.mrf.mxu0  ;;  %v530_v35 = vpop.f32.mrf.mxu1 }
 0x1a5   :  { %v518_v51 = vadd.f32 %v517_v34, %v187_v42  ;;  %v531_v0 = vadd.f32 %v530_v35, %v188_v52 }
 0x1a7   :  { %v575_v63 = vmax.f32 %v466_v54, %v518_v51  ;;  %v576_v8 = vmax.f32 %v479_v1, %v531_v0 }
 0x1a9   :  { %v491_v36 = vpop.f32.mrf.mxu2  ;;  %v504_v37 = vpop.f32.mrf.mxu3 }
 0x1aa   :  { %v492_v56 = vadd.f32 %v491_v36, %v185_v44  ;;  %v505_v57 = vadd.f32 %v504_v37, %v186_v47 }
 0x1ac   :  { %v519_v38 = vpop.f32.mrf.mxu0  ;;  %v532_v39 = vpop.f32.mrf.mxu1  ;;  %v573_v32 = vmax.f32 %v440_v61, %v492_v56  ;;  %v574_v4 = vmax.f32 %v453_v62, %v505_v57 }
 0x1b1   :  { %v493_v45 = vpop.f32.mrf.mxu2  ;;  %v506_v46 = vpop.f32.mrf.mxu3 }
 0x1b4   :  { %v569_v53 = vpop.f32.mrf.mxu0 }
 0x1b5   :  { %v1111_v58 = vadd.f32 %v569_v53, %v191_v48 }
 0x1b7   :  { %v579_v5 = vmax.f32 %v575_v63, %v1111_v58 }
 0x1b9   :  { %v543_v2 = vpop.f32.mrf.mxu2  ;;  %v556_v3 = vpop.f32.mrf.mxu3  ;;  %v581_v13 = vmax.f32 %v579_v5, %v576_v8 }
 0x1ba   :  { %v544_v6 = vadd.f32 %v543_v2, %v189_v59  ;;  %v557_v7 = vadd.f32 %v556_v3, %v190_v60 }
 0x1bc   :  { %v577_v9 = vmax.f32 %v573_v32, %v544_v6  ;;  %v578_v10 = vmax.f32 %v574_v4, %v557_v7  ;;  %v571_v11 = vpop.f32.mrf.mxu0 }
 0x1be   :  { %v580_v12 = vmax.f32 %v577_v9, %v578_v10 }
 0x1c0   :  { %v582_v14 = vmax.f32 %v580_v12, %v581_v13 }
 0x1c1   :  { %v545_v15 = vpop.f32.mrf.mxu2  ;;  %v558_v16 = vpop.f32.mrf.mxu3 }
 0x1c2   :  { %583 = vmax.xlane.f32.xlu0 %v582_v14 }
 0x235   :  { %v584_v17 = vpop.xlane.xlu0 %583 }
 0x236   :  { %v585_v18 = vsub.f32 %v440_v61, %v584_v17  ;;  %v586_v19 = vsub.f32 %v453_v62, %v584_v17  ;;  %v587_v20 = vsub.f32 %v466_v54, %v584_v17  ;;  %v588_v21 = vsub.f32 %v479_v1, %v584_v17 }
 0x237   :  { %v589_v23 = vsub.f32 %v492_v56, %v584_v17  ;;  %v590_v26 = vsub.f32 %v505_v57, %v584_v17  ;;  %v591_v28 = vsub.f32 %v518_v51, %v584_v17  ;;  %v592_v30 = vsub.f32 %v531_v0, %v584_v17 }
 0x238   :  { %v596_v22 = vmul.f32 1.442695, %v585_v18  ;;  %v598_v24 = vmul.f32 1.442695, %v586_v19  ;;  %v600_v25 = vmul.f32 1.442695, %v587_v20  ;;  %v593_v35 = vsub.f32 %v544_v6, %v584_v17 }
 0x239   :  { %v602_v27 = vmul.f32 1.442695, %v588_v21  ;;  %v604_v29 = vmul.f32 1.442695, %v589_v23  ;;  %v606_v31 = vmul.f32 1.442695, %v590_v26  ;;  %v594_v39 = vsub.f32 %v557_v7, %v584_v17 }
 0x23a   :  { %952 = vpow2.f32 %v596_v22  ;;  %v608_v36 = vmul.f32 1.442695, %v591_v28  ;;  %v610_v40 = vmul.f32 1.442695, %v592_v30  ;;  %v595_v43 = vsub.f32 %v1111_v58, %v584_v17 }
 0x23b   :  { %954 = vpow2.f32 %v598_v24  ;;  %v612_v44 = vmul.f32 1.442695, %v593_v35  ;;  %v614_v47 = vmul.f32 1.442695, %v594_v39 }
 0x23c   :  { %956 = vpow2.f32 %v600_v25  ;;  %v616_v50 = vmul.f32 1.442695, %v595_v43 }
 0x23d   :  { %958 = vpow2.f32 %v602_v27 }
 0x23e   :  { %960 = vpow2.f32 %v604_v29 }
 0x23f   :  { %962 = vpow2.f32 %v606_v31 }
 0x240   :  { %v953_v33 = vpop.eup %952  ;;  %964 = vpow2.f32 %v608_v36 }
 0x241   :  { %v955_v34 = vpop.eup %954  ;;  %966 = vpow2.f32 %v610_v40 }
 0x242   :  { %v618_v37 = vadd.f32 %v955_v34, %v953_v33  ;;  %v957_v38 = vpop.eup %956  ;;  %968 = vpow2.f32 %v612_v44 }
 0x243   :  { %v959_v42 = vpop.eup %958  ;;  %970 = vpow2.f32 %v614_v47 }
 0x244   :  { %v619_v41 = vadd.f32 %v957_v38, %v618_v37  ;;  %v961_v46 = vpop.eup %960  ;;  %972 = vpow2.f32 %v616_v50 }
 0x245   :  { %v963_v49 = vpop.eup %962 }
 0x246   :  { %v620_v45 = vadd.f32 %v959_v42, %v619_v41  ;;  %v965_v52 = vpop.eup %964 }
 0x247   :  { %v967_v54 = vpop.eup %966 }
 0x248   :  { %v621_v48 = vadd.f32 %v961_v46, %v620_v45  ;;  %v969_v56 = vpop.eup %968 }
 0x249   :  { %v971_v58 = vpop.eup %970 }
 0x24a   :  { %v622_v51 = vadd.f32 %v963_v49, %v621_v48  ;;  %v973_v60 = vpop.eup %972 }
 0x24c   :  { %v623_v53 = vadd.f32 %v965_v52, %v622_v51 }
 0x24e   :  { %v624_v55 = vadd.f32 %v967_v54, %v623_v53 }
 0x250   :  { %v625_v57 = vadd.f32 %v969_v56, %v624_v55 }
 0x252   :  { %v626_v59 = vadd.f32 %v971_v58, %v625_v57 }
 0x254   :  { %v627_v61 = vadd.f32 %v973_v60, %v626_v59 }
 0x256   :  { %628 = vadd.xlane.f32.xlu0 %v627_v61 }
 0x2c9   :  { %v629_v62 = vpop.xlane.xlu0 %628 }
 0x2ca   :  { %974 = vrcp.f32 %v629_v62  ;;  %v641_v32 = vand.u32 2147483648, %v629_v62  ;;  %v639_v3 = vand.u32 2147483647, %v629_v62  ;;  %vm635_vm3 = vweird.f32 %v629_v62 }
 0x2cc   :  { %v642_v5 = vor.u32 1.1754944e-38, %v641_v32  ;;  %vm640_vm5 = vcmp.eq.f32.partialorder %v639_v3, 8.507059e+37 }
 0x2d0   :  { %v975_v63 = vpop.eup %974 }
 0x2d1   :  { %v631_v0 = vmul.f32 %v975_v63, %v629_v62  ;;  %vm636_vm2 = vweird.f32 %v975_v63 }
 0x2d2   :  { %vm637_vm4 = vmor %vm635_vm3, %vm636_vm2 }
 0x2d3   :  { %v632_v1 = vsub.f32 1.0, %v631_v0 }
 0x2d5   :  { %v633_v2 = vmul.f32 %v975_v63, %v632_v1 }
 0x2d7   :  { %v634_v4 = vadd.f32 %v975_v63, %v633_v2 }
 0x2d9   :  { %v638_v6 = vsel %vm637_vm4, %v975_v63, %v634_v4 }
 0x2da   :  { %v643_v7 = vsel %vm640_vm5, %v642_v5, %v638_v6 }
 0x2db   :  { %v645_v8 = vmul.f32 %v953_v33, %v643_v7  ;;  %v646_v9 = vmul.f32 %v955_v34, %v643_v7  ;;  %v647_v10 = vmul.f32 %v957_v38, %v643_v7  ;;  %v648_v11 = vmul.f32 %v959_v42, %v643_v7 }
 0x2dc   :  { %v649_v12 = vmul.f32 %v961_v46, %v643_v7  ;;  %v650_v13 = vmul.f32 %v963_v49, %v643_v7  ;;  %v651_v14 = vmul.f32 %v965_v52, %v643_v7  ;;  %v652_v15 = vmul.f32 %v967_v54, %v643_v7 }
 0x2dd   :  { %656 = vst [vmem:[#allocation5] sm:$0xff] %v645_v8  ;;  %v653_v16 = vmul.f32 %v969_v56, %v643_v7  ;;  %v654_v17 = vmul.f32 %v971_v58, %v643_v7  ;;  %v655_v18 = vmul.f32 %v973_v60, %v643_v7 }
 0x2de   :  { %657 = vst [vmem:[#allocation5 + $0x8] sm:$0xff] %v646_v9 }
 0x2df   :  { %658 = vst [vmem:[#allocation5 + $0x10] sm:$0xff] %v647_v10 }
 0x2e0   :  { %659 = vst [vmem:[#allocation5 + $0x18] sm:$0xff] %v648_v11 }
 0x2e1   :  { %660 = vst [vmem:[#allocation5 + $0x20] sm:$0xff] %v649_v12 }
 0x2e2   :  { %661 = vst [vmem:[#allocation5 + $0x28] sm:$0xff] %v650_v13 }
 0x2e3   :  { %662 = vst [vmem:[#allocation5 + $0x30] sm:$0xff] %v651_v14 }
 0x2e4   :  { %663 = vst [vmem:[#allocation5 + $0x38] sm:$0xff] %v652_v15 }
 0x2e5   :  { %664 = vst [vmem:[#allocation5 + $0x40] sm:$0xff] %v653_v16 }
 0x2e6   :  { %665 = vst [vmem:[#allocation5 + $0x48] sm:$0xff] %v654_v17 }
 0x2e7   :  { %667 = vst.msk [vmem:[#allocation5 + $0x50] sm:$0xff] %vm666_vm6, %v655_v18 }
 0x2e8   :  { %678 = dma.vmem_to_hbm [thread:$0]  %s674_s16, 1408, %s676_s19, [#allocation4]  }
 0x2e9   :  { %1026 = dma.done.wait [#allocation4], 1408  }
 0x2ea   :  { %1027 = vsyncadd [#allocation4], 4294965888 }
 0x2eb   :  { %683 = vsyncpa [#allocation3], 1 }
 0x2ec   :  { %684 = vsyncpa [#allocation4], 1 }

</bundles_post_ra>
